<compile_context>
chip_gen: v7x
topology: tpu7x:2x2x1
jax: 0.10.0
libtpu: 0.0.40
codegen_flags: <defaults>
</compile_context>

<pallas_src>
import jax
import jax.numpy as jnp
from jax.experimental import pallas as pl
from jax.experimental.pallas import tpu as pltpu

hidden_size = 64
input_size = 4
num_classes = 2
num_layers = 1


def rnn_fc_kernel(x_ref, w_ih_ref, w_hh_ref, b_ref, w_fc_ref, b_fc_ref, out_ref):
    # x_ref:    (T*B, D)    bf16   time-major, batch padded to a multiple of 8
    # w_ih_ref: (D, H)      bf16
    # w_hh_ref: (H, H)      bf16
    # b_ref:    (1, H)      f32    (b_ih + b_hh), folded in once
    # w_fc_ref: (H, C_pad)  bf16   zero-padded to 128 lanes
    # b_fc_ref: (1, C_pad)  f32
    # out_ref:  (B, C_pad)  f32
    TB = x_ref.shape[0]
    B = out_ref.shape[0]
    T = TB // B

    # Prologue: one MXU matmul for the input projection over ALL timesteps,
    # bias folded in once.  Result stays in vregs (no scratch round trip).
    xw = (
        jnp.dot(x_ref[...], w_ih_ref[...], preferred_element_type=jnp.float32)
        + b_ref[...]
    )

    # Recurrent weight stays resident (bf16) for the whole unrolled loop.
    w_hh = w_hh_ref[...]
    H = w_hh.shape[1]

    # Fully unrolled recurrence (T static).  Slices of xw are static and
    # sublane-aligned because B is a multiple of 8.
    h = jnp.zeros((B, H), jnp.float32)
    for t in range(T):
        xw_t = xw[t * B:(t + 1) * B, :]
        h = jnp.tanh(
            xw_t
            + jnp.dot(h.astype(w_hh.dtype), w_hh,
                      preferred_element_type=jnp.float32)
        )

    # Final FC fused in; output is lane-padded to 128 so this is one unmasked
    # vreg store.
    out_ref[...] = (
        jnp.dot(h.astype(w_fc_ref.dtype), w_fc_ref[...],
                preferred_element_type=jnp.float32)
        + b_fc_ref[...]
    ).astype(out_ref.dtype)


def rnn_model_forward(x, params):
    """x: (B, T, input_size) float32. Returns (B, num_classes) float32."""
    w_ih, w_hh, b_ih, b_hh, w_fc, b_fc = params
    B, T, D = x.shape
    H = w_hh.shape[0]
    C = w_fc.shape[0]

    # Pad batch to the sublane granularity (8): every in-kernel row slice is a
    # clean (8, lanes) vreg view.
    B_pad = max(8, ((B + 7) // 8) * 8)
    pad_b = B_pad - B
    x_p = jnp.pad(x, ((0, pad_b), (0, 0), (0, 0))) if pad_b else x

    # (B,T,D) -> (T,B,D) -> (T*B, D), done in XLA (never reshaped in-kernel).
    x_flat = jnp.transpose(x_p, (1, 0, 2)).reshape(T * B_pad, D)

    # Pad the FC output dim to a full 128-lane width for an unmasked store.
    C_pad = max(128, ((C + 127) // 128) * 128)
    pad_c = C_pad - C

    # bf16 MXU operands, f32 accumulation / biases.
    x_flat = x_flat.astype(jnp.bfloat16)
    w_ih_t = w_ih.T.astype(jnp.bfloat16)                                # (D, H)
    w_hh_t = w_hh.T.astype(jnp.bfloat16)                                # (H, H)
    b_comb = (b_ih + b_hh).reshape(1, H).astype(jnp.float32)            # (1, H)
    w_fc_t = jnp.pad(w_fc.T, ((0, 0), (0, pad_c))).astype(jnp.bfloat16)  # (H, C_pad)
    b_fc_2d = jnp.pad(b_fc, (0, pad_c)).reshape(1, C_pad).astype(jnp.float32)

    vmem = pl.BlockSpec(memory_space=pltpu.MemorySpace.VMEM)
    out_pad = pl.pallas_call(
        rnn_fc_kernel,
        out_shape=jax.ShapeDtypeStruct((B_pad, C_pad), jnp.float32),
        in_specs=[vmem] * 6,
        out_specs=vmem,
    )(x_flat, w_ih_t, w_hh_t, b_comb, w_fc_t, b_fc_2d)
    return out_pad[:B, :C]


def init_params(key, input_size, hidden_size, num_classes):
    # PyTorch-style uniform(-1/sqrt(H), 1/sqrt(H)) init, deterministic from key.
    ks = jax.random.split(key, 6)
    k_rnn = 1.0 / jnp.sqrt(hidden_size)
    k_fc = 1.0 / jnp.sqrt(hidden_size)
    w_ih = jax.random.uniform(ks[0], (hidden_size, input_size), jnp.float32, -k_rnn, k_rnn)
    w_hh = jax.random.uniform(ks[1], (hidden_size, hidden_size), jnp.float32, -k_rnn, k_rnn)
    b_ih = jax.random.uniform(ks[2], (hidden_size,), jnp.float32, -k_rnn, k_rnn)
    b_hh = jax.random.uniform(ks[3], (hidden_size,), jnp.float32, -k_rnn, k_rnn)
    w_fc = jax.random.uniform(ks[4], (num_classes, hidden_size), jnp.float32, -k_fc, k_fc)
    b_fc = jax.random.uniform(ks[5], (num_classes,), jnp.float32, -k_fc, k_fc)
    return (w_ih, w_hh, b_ih, b_hh, w_fc, b_fc)


def reference_forward(x, params):
    # Pure-JAX f32 reference of the PyTorch forward (correctness check).
    w_ih, w_hh, b_ih, b_hh, w_fc, b_fc = params
    B, T, D = x.shape
    h = jnp.zeros((B, w_hh.shape[0]), jnp.float32)
    for t in range(T):
        h = jnp.tanh(x[:, t, :] @ w_ih.T + b_ih + h @ w_hh.T + b_hh)
    return h @ w_fc.T + b_fc


if __name__ == "__main__":
    key = jax.random.PRNGKey(0)
    k_x, k_p = jax.random.split(key)

    batch, seq_len = 2, 8
    x = jax.random.normal(k_x, (batch, seq_len, input_size), jnp.float32)
    params = init_params(k_p, input_size, hidden_size, num_classes)

    fwd = jax.jit(rnn_model_forward)
    out = fwd(x, params)
    out = jax.block_until_ready(out)

    ref = reference_forward(x, params)
    assert out.shape == (batch, num_classes)
    # Tolerance relaxed vs. pure-f32 because matmul operands are bf16
    # (f32 accumulation); deviation from fp32 PyTorch is ~1e-3..1e-2.
    assert jnp.allclose(out, ref, atol=2e-2, rtol=2e-2), (out, ref)

    print("KERNEL_OK")
</pallas_src>

<mosaic_0001>
module attributes {stable_mosaic.version = 11 : i64} {
  func.func @rnn_fc_kernel(%arg0: memref<64x4xbf16, #tpu.memory_space<vmem>>, %arg1: memref<4x64xbf16, #tpu.memory_space<vmem>>, %arg2: memref<64x64xbf16, #tpu.memory_space<vmem>>, %arg3: memref<1x64xf32, #tpu.memory_space<vmem>>, %arg4: memref<64x128xbf16, #tpu.memory_space<vmem>>, %arg5: memref<1x128xf32, #tpu.memory_space<vmem>>, %arg6: memref<8x128xf32, #tpu.memory_space<vmem>>) attributes {dimension_semantics = [], scalar_prefetch = 0 : i64, scratch_operands = 0 : i64, tpu.core_type = #tpu.core_type<tc>} {
    %c0 = arith.constant 0 : index
    %c0_0 = arith.constant 0 : index
    %0 = vector.load %arg0[%c0, %c0_0] : memref<64x4xbf16, #tpu.memory_space<vmem>>, vector<64x4xbf16>
    %c0_1 = arith.constant 0 : index
    %c0_2 = arith.constant 0 : index
    %1 = vector.load %arg1[%c0_1, %c0_2] : memref<4x64xbf16, #tpu.memory_space<vmem>>, vector<4x64xbf16>
    %cst = arith.constant dense<0.000000e+00> : vector<64x64xf32>
    %2 = tpu.matmul %0, %1, %cst {dimension_numbers = #tpu.dot_dimension_numbers<[1], [0], [0], [1], [0, 0, 1, 1], [], []>} : vector<64x4xbf16>, vector<4x64xbf16>, vector<64x64xf32> -> vector<64x64xf32>
    %c0_3 = arith.constant 0 : index
    %c0_4 = arith.constant 0 : index
    %3 = vector.load %arg3[%c0_3, %c0_4] : memref<1x64xf32, #tpu.memory_space<vmem>>, vector<1x64xf32>
    %4 = vector.broadcast %3 : vector<1x64xf32> to vector<64x64xf32>
    %5 = arith.addf %2, %4 : vector<64x64xf32>
    %c0_5 = arith.constant 0 : index
    %c0_6 = arith.constant 0 : index
    %6 = vector.load %arg2[%c0_5, %c0_6] : memref<64x64xbf16, #tpu.memory_space<vmem>>, vector<64x64xbf16>
    %cst_7 = arith.constant 0.000000e+00 : f32
    %7 = vector.broadcast %cst_7 : f32 to vector<8x64xf32>
    %8 = vector.extract_strided_slice %5 {offsets = [0, 0], sizes = [8, 64], strides = [1, 1]} : vector<64x64xf32> to vector<8x64xf32>
    %9 = arith.truncf %7 : vector<8x64xf32> to vector<8x64xbf16>
    %cst_8 = arith.constant dense<0.000000e+00> : vector<8x64xf32>
    %10 = tpu.matmul %9, %6, %cst_8 {dimension_numbers = #tpu.dot_dimension_numbers<[1], [0], [0], [1], [0, 0, 1, 1], [], []>} : vector<8x64xbf16>, vector<64x64xbf16>, vector<8x64xf32> -> vector<8x64xf32>
    %11 = arith.addf %8, %10 : vector<8x64xf32>
    %12 = math.tanh %11 : vector<8x64xf32>
    %13 = vector.extract_strided_slice %5 {offsets = [8, 0], sizes = [8, 64], strides = [1, 1]} : vector<64x64xf32> to vector<8x64xf32>
    %14 = arith.truncf %12 : vector<8x64xf32> to vector<8x64xbf16>
    %cst_9 = arith.constant dense<0.000000e+00> : vector<8x64xf32>
    %15 = tpu.matmul %14, %6, %cst_9 {dimension_numbers = #tpu.dot_dimension_numbers<[1], [0], [0], [1], [0, 0, 1, 1], [], []>} : vector<8x64xbf16>, vector<64x64xbf16>, vector<8x64xf32> -> vector<8x64xf32>
    %16 = arith.addf %13, %15 : vector<8x64xf32>
    %17 = math.tanh %16 : vector<8x64xf32>
    %18 = vector.extract_strided_slice %5 {offsets = [16, 0], sizes = [8, 64], strides = [1, 1]} : vector<64x64xf32> to vector<8x64xf32>
    %19 = arith.truncf %17 : vector<8x64xf32> to vector<8x64xbf16>
    %cst_10 = arith.constant dense<0.000000e+00> : vector<8x64xf32>
    %20 = tpu.matmul %19, %6, %cst_10 {dimension_numbers = #tpu.dot_dimension_numbers<[1], [0], [0], [1], [0, 0, 1, 1], [], []>} : vector<8x64xbf16>, vector<64x64xbf16>, vector<8x64xf32> -> vector<8x64xf32>
    %21 = arith.addf %18, %20 : vector<8x64xf32>
    %22 = math.tanh %21 : vector<8x64xf32>
    %23 = vector.extract_strided_slice %5 {offsets = [24, 0], sizes = [8, 64], strides = [1, 1]} : vector<64x64xf32> to vector<8x64xf32>
    %24 = arith.truncf %22 : vector<8x64xf32> to vector<8x64xbf16>
    %cst_11 = arith.constant dense<0.000000e+00> : vector<8x64xf32>
    %25 = tpu.matmul %24, %6, %cst_11 {dimension_numbers = #tpu.dot_dimension_numbers<[1], [0], [0], [1], [0, 0, 1, 1], [], []>} : vector<8x64xbf16>, vector<64x64xbf16>, vector<8x64xf32> -> vector<8x64xf32>
    %26 = arith.addf %23, %25 : vector<8x64xf32>
    %27 = math.tanh %26 : vector<8x64xf32>
    %28 = vector.extract_strided_slice %5 {offsets = [32, 0], sizes = [8, 64], strides = [1, 1]} : vector<64x64xf32> to vector<8x64xf32>
    %29 = arith.truncf %27 : vector<8x64xf32> to vector<8x64xbf16>
    %cst_12 = arith.constant dense<0.000000e+00> : vector<8x64xf32>
    %30 = tpu.matmul %29, %6, %cst_12 {dimension_numbers = #tpu.dot_dimension_numbers<[1], [0], [0], [1], [0, 0, 1, 1], [], []>} : vector<8x64xbf16>, vector<64x64xbf16>, vector<8x64xf32> -> vector<8x64xf32>
    %31 = arith.addf %28, %30 : vector<8x64xf32>
    %32 = math.tanh %31 : vector<8x64xf32>
    %33 = vector.extract_strided_slice %5 {offsets = [40, 0], sizes = [8, 64], strides = [1, 1]} : vector<64x64xf32> to vector<8x64xf32>
    %34 = arith.truncf %32 : vector<8x64xf32> to vector<8x64xbf16>
    %cst_13 = arith.constant dense<0.000000e+00> : vector<8x64xf32>
    %35 = tpu.matmul %34, %6, %cst_13 {dimension_numbers = #tpu.dot_dimension_numbers<[1], [0], [0], [1], [0, 0, 1, 1], [], []>} : vector<8x64xbf16>, vector<64x64xbf16>, vector<8x64xf32> -> vector<8x64xf32>
    %36 = arith.addf %33, %35 : vector<8x64xf32>
    %37 = math.tanh %36 : vector<8x64xf32>
    %38 = vector.extract_strided_slice %5 {offsets = [48, 0], sizes = [8, 64], strides = [1, 1]} : vector<64x64xf32> to vector<8x64xf32>
    %39 = arith.truncf %37 : vector<8x64xf32> to vector<8x64xbf16>
    %cst_14 = arith.constant dense<0.000000e+00> : vector<8x64xf32>
    %40 = tpu.matmul %39, %6, %cst_14 {dimension_numbers = #tpu.dot_dimension_numbers<[1], [0], [0], [1], [0, 0, 1, 1], [], []>} : vector<8x64xbf16>, vector<64x64xbf16>, vector<8x64xf32> -> vector<8x64xf32>
    %41 = arith.addf %38, %40 : vector<8x64xf32>
    %42 = math.tanh %41 : vector<8x64xf32>
    %43 = vector.extract_strided_slice %5 {offsets = [56, 0], sizes = [8, 64], strides = [1, 1]} : vector<64x64xf32> to vector<8x64xf32>
    %44 = arith.truncf %42 : vector<8x64xf32> to vector<8x64xbf16>
    %cst_15 = arith.constant dense<0.000000e+00> : vector<8x64xf32>
    %45 = tpu.matmul %44, %6, %cst_15 {dimension_numbers = #tpu.dot_dimension_numbers<[1], [0], [0], [1], [0, 0, 1, 1], [], []>} : vector<8x64xbf16>, vector<64x64xbf16>, vector<8x64xf32> -> vector<8x64xf32>
    %46 = arith.addf %43, %45 : vector<8x64xf32>
    %47 = math.tanh %46 : vector<8x64xf32>
    %48 = arith.truncf %47 : vector<8x64xf32> to vector<8x64xbf16>
    %c0_16 = arith.constant 0 : index
    %c0_17 = arith.constant 0 : index
    %49 = vector.load %arg4[%c0_16, %c0_17] : memref<64x128xbf16, #tpu.memory_space<vmem>>, vector<64x128xbf16>
    %cst_18 = arith.constant dense<0.000000e+00> : vector<8x128xf32>
    %50 = tpu.matmul %48, %49, %cst_18 {dimension_numbers = #tpu.dot_dimension_numbers<[1], [0], [0], [1], [0, 0, 1, 1], [], []>} : vector<8x64xbf16>, vector<64x128xbf16>, vector<8x128xf32> -> vector<8x128xf32>
    %c0_19 = arith.constant 0 : index
    %c0_20 = arith.constant 0 : index
    %51 = vector.load %arg5[%c0_19, %c0_20] : memref<1x128xf32, #tpu.memory_space<vmem>>, vector<1x128xf32>
    %52 = vector.broadcast %51 : vector<1x128xf32> to vector<8x128xf32>
    %53 = arith.addf %50, %52 : vector<8x128xf32>
    %c0_21 = arith.constant 0 : index
    %c0_22 = arith.constant 0 : index
    %54 = vector.load %arg6[%c0_21, %c0_22] : memref<8x128xf32, #tpu.memory_space<vmem>>, vector<8x128xf32>
    tpu.vector_store %arg6[%c0_21, %c0_22], %53 {strides = array<i32>} : memref<8x128xf32, #tpu.memory_space<vmem>>, vector<8x128xf32>,
    return
  }
}

</mosaic_0001>

<bundles_post_ra>
// kernel: rnn_model_forward.1
= control target key start
LH: loop header
LB: loop body
LE: loop exit
PB: predicated region body
PF: predicated region fallthrough
CT: control target
= control target key end

     0   :  { %v856_v0 = vmov 0.0   ;;  %vm73_vm0 = vcmask 1041408   ;;  %vm857_vm1 = vmmov 0   ;;  %vm60_vm2 = vcmask 31744   ;;  %s1070_s2 = inlined_call_operand.vmem [shape: bf16[64,64], index: 2, kind: input, shape index: {}]   ;;  %s1071_s1 = inlined_call_operand.vmem [shape: bf16[4,64], index: 1, kind: input, shape index: {}]   ;;  %s1072_s0 = inlined_call_operand.vmem [shape: bf16[64,4], index: 0, kind: input, shape index: {}]   ;;  %s1073_s3 = inlined_call_operand.vmem [shape: f32[1,64], index: 3, kind: input, shape index: {}]   ;;  %s1074_s4 = inlined_call_operand.vmem [shape: bf16[64,128], index: 4, kind: input, shape index: {}]   ;;  %s1075_s5 = inlined_call_operand.vmem [shape: f32[1,128], index: 5, kind: input, shape index: {}]   ;;  %s1076_s6 = inlined_call_operand.vmem [shape: f32[8,128], index: 6, kind: output, shape index: {}]  }
   0x1   :  { %716 = vmatprep.subr.bf16.mxu1 %v856_v0  ;;  %v898_v1 = vld [vmem:[%s1070_s2] sm:$0xff]   ;;  %724 = vmatprep.mubr.msk.bf16.mxu1 %vm857_vm1, %v856_v0  ;;  %v905_v2 = vld [vmem:[%s1070_s2 + $0x8] sm:$0xff]   ;;  %v924_v7 = vld [vmem:[%s1070_s2 + $0x10] sm:$0xff]   ;;  %v858_v9 = vmov 0   ;;  %vm174_vm3 = vcmask 523264  }
   0x2   :  { %717 = vmatpush3.bf16.msra.mxu1 %v898_v1  ;;  %v32_v3 = vld [vmem:[%s1071_s1] sm:$0x3]  ;;  %v832_v6 = vld [vmem:[%s1072_s0 + $0x8] sm:$0xff]   ;;  %v934_v8 = vld [vmem:[%s1070_s2 + $0x18] sm:$0xff]  }
   0x3   :  { %718 = vmatprep.subr.bf16.mxu1 %v856_v0  ;;  %824 = vmatprep.subr.msk.bf16.mxu0 %vm73_vm0, %v32_v3  ;;  %v75_v4 = vsel %vm73_vm0, %v32_v3, 0  ;;  %v830_v5 = vld [vmem:[%s1072_s0] sm:$0xff]   ;;  %v834_v10 = vld [vmem:[%s1072_s0 + $0x10] sm:$0xff]   ;;  %v835_v11 = vld [vmem:[%s1072_s0 + $0x18] sm:$0xff]  }
   0x4   :  { %707 = vmatpush3.bf16.msra.mxu0 %v75_v4  ;;  %708 = vmatprep.mubr.msk.bf16.mxu0 %vm60_vm2, %v830_v5  ;;  %v970_v16 = vld [vmem:[%s1073_s3] ss:$0 sm:$0xff] }
   0x5   :  { %728 = vmatprep.subr.bf16.mxu0 %v856_v0 }
   0x6   :  { %719 = vmatpush3.bf16.msra.mxu1 %v905_v2 }
   0x7   :  { %720 = vmatprep.subr.bf16.mxu1 %v856_v0  ;;  %709 = vmatmul.mubr.msk.bf16.vlgmr.msra.gmra.mrb[0].mxu0 %vm60_vm2, %v832_v6 }
   0x8   :  { %729 = vmatpush3.bf16.msra.mxu0 %v898_v1  ;;  %712 = vmatprep.mubr.msk.bf16.mxu0 %vm60_vm2, %v834_v10 }
   0x9   :  { %730 = vmatprep.subr.bf16.mxu0 %v856_v0 }
   0xa   :  { %721 = vmatpush3.bf16.msra.mxu1 %v924_v7 }
   0xb   :  { %722 = vmatprep.subr.bf16.mxu1 %v856_v0 }
   0xc   :  { %731 = vmatpush3.bf16.msra.mxu0 %v905_v2 }
   0xd   :  { %732 = vmatprep.subr.bf16.mxu0 %v856_v0 }
   0xe   :  { %723 = vmatpush3.bf16.msra.mxu1 %v934_v8 }
   0xf   :  { %740 = vmatprep.subr.bf16.mxu1 %v856_v0  ;;  %713 = vmatmul.mubr.msk.bf16.gmra.mrb[4].mxu0 %vm60_vm2, %v835_v11 }
  0x10   :  { %733 = vmatpush3.bf16.msra.mxu0 %v924_v7  ;;  %736 = vmatprep.mubr.msk.bf16.mxu0 %vm857_vm1, %v856_v0 }
  0x11   :  { %725 = vmatmul.mubr.bf16.vlgmr.msra.gmra.mrb[0].mxu1 %v858_v9  ;;  %734 = vmatprep.subr.bf16.mxu0 %v856_v0 }
  0x12   :  { %741 = vmatpush3.bf16.msra.mxu1 %v898_v1  ;;  %748 = vmatprep.mubr.msk.bf16.mxu1 %vm857_vm1, %v856_v0 }
  0x13   :  { %742 = vmatprep.subr.bf16.mxu1 %v856_v0 }
  0x14   :  { %735 = vmatpush3.bf16.msra.mxu0 %v934_v8 }
  0x15   :  { %752 = vmatprep.subr.bf16.mxu0 %v856_v0 }
  0x16   :  { %743 = vmatpush3.bf16.msra.mxu1 %v905_v2 }
  0x17   :  { %744 = vmatprep.subr.bf16.mxu1 %v856_v0 }
  0x1a   :  { %745 = vmatpush3.bf16.msra.mxu1 %v924_v7 }
  0x1b   :  { %746 = vmatprep.subr.bf16.mxu1 %v856_v0 }
  0x1e   :  { %747 = vmatpush3.bf16.msra.mxu1 %v934_v8 }
  0x1f   :  { %764 = vmatprep.subr.bf16.mxu1 %v856_v0 }
  0xda   :  { %v710_v12 = vpop.f32.mrb[0].mxu0 }
  0xdb   :  { %v111_v13 = vpop.f32.mrb[1].mxu0  ;;  %v120_v37 = vadd.f32 %v710_v12, %v970_v16 }
  0xdc   :  { %v965_v14 = vpop.f32.mrb[2].mxu0  ;;  %v112_v17 = vadd.f32 %v970_v16, %v111_v13 }
  0xdd   :  { %v114_v15 = vpop.f32.mrb[3].mxu0  ;;  %v123_v45 = vadd.f32 %v965_v14, %v970_v16  ;;  %v836_v14 = vld [vmem:[%s1074_s4] sm:$0xff]  }
  0xde   :  { %v115_v29 = vadd.f32 %v970_v16, %v114_v15  ;;  %v837_v15 = vld [vmem:[%s1074_s4 + $0x8] sm:$0xff]  }
  0xe2   :  { %v984_v25 = vpop.f32.mrb[4].mxu0 }
  0xe3   :  { %v127_v26 = vpop.f32.mrb[5].mxu0 }
  0xe4   :  { %v212_v18 = vpop.f32.mrb[0].mxu1  ;;  %v986_v27 = vpop.f32.mrb[6].mxu0  ;;  %v128_v53 = vadd.f32 %v970_v16, %v127_v26 }
  0xe5   :  { %v218_v19 = vadd.f32 %v212_v18, %v112_v17  ;;  %v726_v20 = vpop.f32.mrb[1].mxu1  ;;  %v988_v28 = vpop.f32.mrb[7].mxu0  ;;  %v838_v17 = vld [vmem:[%s1074_s4 + $0x10] sm:$0xff]   ;;  %v839_v18 = vld [vmem:[%s1074_s4 + $0x18] sm:$0xff]  }
  0xe6   :  { %v215_v21 = vpop.f32.mrb[2].mxu1  ;;  %v131_v61 = vadd.f32 %v970_v16, %v988_v28 }
  0xe7   :  { %840 = vtanh.f32 %v218_v19  ;;  %v727_v22 = vpop.f32.mrb[3].mxu1  ;;  %v139_v19 = vadd.f32 %v986_v27, %v970_v16 }
  0xf1   :  { %v841_v23 = vpop.eup %840 }
  0xf2   :  { %v220_v24 = vpack.c.bf16 %v841_v23, %v841_v23 }
  0xf4   :  { %737 = vmatmul.mubr.msk.bf16.vlgmr.msra.gmra.mrb[8].mxu0 %vm174_vm3, %v220_v24 }
  0xf5   :  { %753 = vmatpush3.bf16.msra.mxu0 %v898_v1  ;;  %760 = vmatprep.mubr.msk.bf16.mxu0 %vm857_vm1, %v856_v0 }
  0xf6   :  { %754 = vmatprep.subr.bf16.mxu0 %v856_v0 }
  0xf9   :  { %755 = vmatpush3.bf16.msra.mxu0 %v905_v2 }
  0xfa   :  { %756 = vmatprep.subr.bf16.mxu0 %v856_v0 }
  0xfd   :  { %757 = vmatpush3.bf16.msra.mxu0 %v924_v7 }
  0xfe   :  { %758 = vmatprep.subr.bf16.mxu0 %v856_v0 }
 0x101   :  { %759 = vmatpush3.bf16.msra.mxu0 %v934_v8 }
 0x102   :  { %776 = vmatprep.subr.bf16.mxu0 %v856_v0 }
 0x1c7   :  { %v258_v30 = vpop.f32.mrb[8].mxu0 }
 0x1c8   :  { %v264_v31 = vadd.f32 %v258_v30, %v115_v29  ;;  %v738_v32 = vpop.f32.mrb[9].mxu0 }
 0x1c9   :  { %v261_v33 = vpop.f32.mrb[10].mxu0 }
 0x1ca   :  { %842 = vtanh.f32 %v264_v31  ;;  %v739_v34 = vpop.f32.mrb[11].mxu0 }
 0x1d4   :  { %v843_v35 = vpop.eup %842 }
 0x1d5   :  { %v266_v36 = vpack.c.bf16 %v843_v35, %v843_v35 }
 0x1d7   :  { %749 = vmatmul.mubr.msk.bf16.vlgmr.msra.gmra.mrb[4].mxu1 %vm174_vm3, %v266_v36 }
 0x1d8   :  { %765 = vmatpush3.bf16.msra.mxu1 %v898_v1  ;;  %772 = vmatprep.mubr.msk.bf16.mxu1 %vm857_vm1, %v856_v0 }
 0x1d9   :  { %766 = vmatprep.subr.bf16.mxu1 %v856_v0 }
 0x1dc   :  { %767 = vmatpush3.bf16.msra.mxu1 %v905_v2 }
 0x1dd   :  { %768 = vmatprep.subr.bf16.mxu1 %v856_v0 }
 0x1e0   :  { %769 = vmatpush3.bf16.msra.mxu1 %v924_v7 }
 0x1e1   :  { %770 = vmatprep.subr.bf16.mxu1 %v856_v0 }
 0x1e4   :  { %771 = vmatpush3.bf16.msra.mxu1 %v934_v8 }
 0x1e5   :  { %788 = vmatprep.subr.bf16.mxu1 %v856_v0 }
 0x2aa   :  { %v304_v38 = vpop.f32.mrb[4].mxu1 }
 0x2ab   :  { %v310_v39 = vadd.f32 %v304_v38, %v120_v37  ;;  %v750_v40 = vpop.f32.mrb[5].mxu1 }
 0x2ac   :  { %v307_v41 = vpop.f32.mrb[6].mxu1 }
 0x2ad   :  { %844 = vtanh.f32 %v310_v39  ;;  %v751_v42 = vpop.f32.mrb[7].mxu1 }
 0x2b7   :  { %v845_v43 = vpop.eup %844 }
 0x2b8   :  { %v312_v44 = vpack.c.bf16 %v845_v43, %v845_v43 }
 0x2ba   :  { %761 = vmatmul.mubr.msk.bf16.vlgmr.msra.gmra.mrb[12].mxu0 %vm174_vm3, %v312_v44 }
 0x2bb   :  { %777 = vmatpush3.bf16.msra.mxu0 %v898_v1  ;;  %784 = vmatprep.mubr.msk.bf16.mxu0 %vm857_vm1, %v856_v0 }
 0x2bc   :  { %778 = vmatprep.subr.bf16.mxu0 %v856_v0 }
 0x2bf   :  { %779 = vmatpush3.bf16.msra.mxu0 %v905_v2 }
 0x2c0   :  { %780 = vmatprep.subr.bf16.mxu0 %v856_v0 }
 0x2c3   :  { %781 = vmatpush3.bf16.msra.mxu0 %v924_v7 }
 0x2c4   :  { %782 = vmatprep.subr.bf16.mxu0 %v856_v0 }
 0x2c7   :  { %783 = vmatpush3.bf16.msra.mxu0 %v934_v8 }
 0x2c8   :  { %800 = vmatprep.subr.bf16.mxu0 %v856_v0 }
 0x38d   :  { %v350_v46 = vpop.f32.mrb[12].mxu0 }
 0x38e   :  { %v356_v47 = vadd.f32 %v350_v46, %v123_v45  ;;  %v762_v48 = vpop.f32.mrb[13].mxu0 }
 0x38f   :  { %v353_v49 = vpop.f32.mrb[14].mxu0 }
 0x390   :  { %846 = vtanh.f32 %v356_v47  ;;  %v763_v50 = vpop.f32.mrb[15].mxu0 }
 0x39a   :  { %v847_v51 = vpop.eup %846 }
 0x39b   :  { %v358_v52 = vpack.c.bf16 %v847_v51, %v847_v51 }
 0x39d   :  { %773 = vmatmul.mubr.msk.bf16.vlgmr.msra.gmra.mrb[8].mxu1 %vm174_vm3, %v358_v52 }
 0x39e   :  { %789 = vmatpush3.bf16.msra.mxu1 %v898_v1  ;;  %796 = vmatprep.mubr.msk.bf16.mxu1 %vm857_vm1, %v856_v0 }
 0x39f   :  { %790 = vmatprep.subr.bf16.mxu1 %v856_v0 }
 0x3a2   :  { %791 = vmatpush3.bf16.msra.mxu1 %v905_v2 }
 0x3a3   :  { %792 = vmatprep.subr.bf16.mxu1 %v856_v0 }
 0x3a6   :  { %793 = vmatpush3.bf16.msra.mxu1 %v924_v7 }
 0x3a7   :  { %794 = vmatprep.subr.bf16.mxu1 %v856_v0 }
 0x3aa   :  { %795 = vmatpush3.bf16.msra.mxu1 %v934_v8 }
 0x3ab   :  { %812 = vmatprep.subr.bf16.mxu1 %v856_v0 }
 0x470   :  { %v396_v54 = vpop.f32.mrb[8].mxu1 }
 0x471   :  { %v402_v55 = vadd.f32 %v396_v54, %v128_v53  ;;  %v774_v56 = vpop.f32.mrb[9].mxu1 }
 0x472   :  { %v399_v57 = vpop.f32.mrb[10].mxu1 }
 0x473   :  { %848 = vtanh.f32 %v402_v55  ;;  %v775_v58 = vpop.f32.mrb[11].mxu1 }
 0x47d   :  { %v849_v59 = vpop.eup %848 }
 0x47e   :  { %v404_v60 = vpack.c.bf16 %v849_v59, %v849_v59 }
 0x480   :  { %785 = vmatmul.mubr.msk.bf16.vlgmr.msra.gmra.mrb[16].mxu0 %vm174_vm3, %v404_v60 }
 0x481   :  { %801 = vmatpush3.bf16.msra.mxu0 %v898_v1  ;;  %808 = vmatprep.mubr.msk.bf16.mxu0 %vm857_vm1, %v856_v0 }
 0x482   :  { %802 = vmatprep.subr.bf16.mxu0 %v856_v0 }
 0x485   :  { %803 = vmatpush3.bf16.msra.mxu0 %v905_v2  ;;  %v136_v2 = vadd.f32 %v984_v25, %v970_v16 }
 0x486   :  { %804 = vmatprep.subr.bf16.mxu0 %v856_v0 }
 0x489   :  { %805 = vmatpush3.bf16.msra.mxu0 %v924_v7 }
 0x48a   :  { %806 = vmatprep.subr.bf16.mxu0 %v856_v0 }
 0x48d   :  { %807 = vmatpush3.bf16.msra.mxu0 %v934_v8 }
 0x553   :  { %v442_v62 = vpop.f32.mrb[16].mxu0 }
 0x554   :  { %v448_v63 = vadd.f32 %v442_v62, %v131_v61  ;;  %v786_v1 = vpop.f32.mrb[17].mxu0 }
 0x555   :  { %v445_v3 = vpop.f32.mrb[18].mxu0 }
 0x556   :  { %850 = vtanh.f32 %v448_v63  ;;  %v787_v4 = vpop.f32.mrb[19].mxu0 }
 0x560   :  { %v851_v5 = vpop.eup %850 }
 0x561   :  { %v450_v6 = vpack.c.bf16 %v851_v5, %v851_v5 }
 0x563   :  { %797 = vmatmul.mubr.msk.bf16.vlgmr.msra.gmra.mrb[12].mxu1 %vm174_vm3, %v450_v6 }
 0x564   :  { %820 = vmatprep.mubr.msk.bf16.mxu1 %vm857_vm1, %v856_v0  ;;  %813 = vmatpush3.bf16.msra.mxu1 %v836_v14 }
 0x565   :  { %814 = vmatprep.subr.bf16.mxu1 %v856_v0 }
 0x568   :  { %815 = vmatpush3.bf16.msra.mxu1 %v837_v15 }
 0x569   :  { %816 = vmatprep.subr.bf16.mxu1 %v856_v0 }
 0x56c   :  { %817 = vmatpush3.bf16.msra.mxu1 %v838_v17 }
 0x56d   :  { %818 = vmatprep.subr.bf16.mxu1 %v856_v0  ;;  %v650_v0 = vld [vmem:[%s1075_s5] ss:$0 sm:$0xff] }
 0x570   :  { %819 = vmatpush3.bf16.msra.mxu1 %v839_v18 }
 0x636   :  { %v488_v7 = vpop.f32.mrb[12].mxu1 }
 0x637   :  { %v494_v8 = vadd.f32 %v488_v7, %v136_v2  ;;  %v798_v9 = vpop.f32.mrb[13].mxu1 }
 0x638   :  { %v491_v10 = vpop.f32.mrb[14].mxu1 }
 0x639   :  { %852 = vtanh.f32 %v494_v8  ;;  %v799_v11 = vpop.f32.mrb[15].mxu1 }
 0x643   :  { %v853_v12 = vpop.eup %852 }
 0x644   :  { %v496_v13 = vpack.c.bf16 %v853_v12, %v853_v12 }
 0x646   :  { %809 = vmatmul.mubr.msk.bf16.vlgmr.msra.gmra.mrb[20].mxu0 %vm174_vm3, %v496_v13 }
 0x719   :  { %v534_v20 = vpop.f32.mrb[20].mxu0 }
 0x71a   :  { %v540_v21 = vadd.f32 %v534_v20, %v139_v19  ;;  %v810_v22 = vpop.f32.mrb[21].mxu0 }
 0x71b   :  { %v537_v23 = vpop.f32.mrb[22].mxu0 }
 0x71c   :  { %854 = vtanh.f32 %v540_v21  ;;  %v811_v24 = vpop.f32.mrb[23].mxu0 }
 0x726   :  { %v855_v25 = vpop.eup %854 }
 0x727   :  { %v542_v26 = vpack.c.bf16 %v855_v25, %v855_v25 }
 0x729   :  { %821 = vmatmul.mubr.msk.bf16.vlgmr.msra.gmra.mrb[16].mxu1 %vm174_vm3, %v542_v26 }
 0x7fc   :  { %v619_v28 = vpop.f32.mrb[16].mxu1 }
 0x7fd   :  { %v620_v29 = vadd.f32 %v650_v0, %v619_v28  ;;  %v822_v30 = vpop.f32.mrb[17].mxu1 }
 0x7fe   :  { %v622_v31 = vpop.f32.mrb[18].mxu1 }
 0x7ff   :  { %625 = vst [vmem:[%s1076_s6] sm:$0xff] %v620_v29  ;;  %v823_v16 = vpop.f32.mrb[19].mxu1 }

</bundles_post_ra>
